<compile_context>
chip_gen: v6e
topology: v6e:2x2x1
jax: 0.10.0
libtpu: 0.0.40
codegen_flags: <defaults>
</compile_context>

<pallas_src>
import functools

import jax
import jax.numpy as jnp
from jax.experimental import pallas as pl
from jax.experimental.pallas import tpu as pltpu


def _counts_dtype():
    """bf16 accumulation where the VPU supports it (v6e / v7x); f32 on v5e-."""
    try:
        kind = jax.devices()[0].device_kind.lower()
    except Exception:
        kind = ""
    if any(v in kind for v in ("v2", "v3", "v4", "v5")):
        return jnp.float32
    return jnp.bfloat16


def cbow_kernel(ids_ref, emb_ref, len_ref, out_ref, *, tv, counts_dtype):
    """Grid = (batch_blocks, vocab_blocks); vocab is the reduction axis."""
    k = pl.program_id(1)

    @pl.when(k == 0)
    def _():
        out_ref[...] = jnp.zeros_like(out_ref)

    ids = ids_ref[...]                              # (tb, S) int32
    tb, seq_len = ids.shape
    local = ids - k * tv                            # tile-relative ids
    lane_iota = jax.lax.broadcasted_iota(jnp.int32, (tb, tv), 1)

    # counts[b, v] = #{s : ids[b, s] == k*tv + v}; built column-by-column so
    # only the (tb, tv) accumulator (+ one compare) is live -> no 3-D spill.
    counts = jnp.zeros((tb, tv), counts_dtype)
    for s in range(seq_len):                        # S is small & static
        col = jax.lax.slice_in_dim(local, s, s + 1, axis=1)       # (tb, 1)
        counts = counts + (col == lane_iota).astype(counts_dtype)

    # sum_s E[ids[b, s]] over this vocab tile == counts @ emb_tile.
    # counts <= S are exact in bf16; emb is already bf16 (cast once outside).
    out_ref[...] += jnp.dot(
        counts.astype(jnp.bfloat16),
        emb_ref[...],
        preferred_element_type=jnp.float32,
    )

    @pl.when(k == pl.num_programs(1) - 1)
    def _():
        # divide by length -> approx reciprocal on the EUP (frees VALU cycles)
        inv_len = pl.reciprocal(len_ref[...], approx=True)         # (tb, 1)
        out_ref[...] = out_ref[...] * inv_len


def _default_tb(B):
    # Prefer >= 2 batch blocks (v7x has 2 TensorCores), tile multiple of 8.
    for t in (128, 64, 32, 16, 8):
        if t <= B and B % t == 0 and B // t >= 2:
            return t
    return B


def _default_tv(V):
    if V <= 1024:
        return V
    for t in (2048, 1024, 512, 256, 128):
        if V % t == 0:
            return t
    return V


def cbow_forward(ids, emb, lengths, *, tb=None, tv=None):
    """ids: (B, S) int32, emb: (V, E) f32, lengths: (B, 1) f32 -> (B, E) f32."""
    B, S = ids.shape
    V, E = emb.shape

    if tb is None:
        tb = _default_tb(B)
    if tv is None:
        tv = _default_tv(V)
    assert B % tb == 0 and V % tv == 0, "tile sizes must divide B / V"
    assert (tb % 8 == 0) or (tb == B), "batch tile must be mult of 8 or full"
    assert (tv % 8 == 0) or (tv == V), "vocab tile must be mult of 8 or full"

    # Cast the embedding stream to bf16 once (halves the dominant DMA bytes).
    emb_bf16 = emb.astype(jnp.bfloat16)
    lengths = lengths.astype(jnp.float32)

    grid = (B // tb, V // tv)                       # reduction axis last
    kernel = functools.partial(cbow_kernel, tv=tv, counts_dtype=_counts_dtype())

    return pl.pallas_call(
        kernel,
        out_shape=jax.ShapeDtypeStruct((B, E), jnp.float32),
        grid_spec=pltpu.PrefetchScalarGridSpec(
            num_scalar_prefetch=0,
            grid=grid,
            in_specs=[
                pl.BlockSpec((tb, S), lambda i, k: (i, 0)),   # token ids
                pl.BlockSpec((tv, E), lambda i, k: (k, 0)),   # bf16 emb tile
                pl.BlockSpec((tb, 1), lambda i, k: (i, 0)),   # lengths
            ],
            out_specs=pl.BlockSpec((tb, E), lambda i, k: (i, 0)),
        ),
        compiler_params=pltpu.CompilerParams(
            dimension_semantics=("parallel", "arbitrary"),
            vmem_limit_bytes=32 * 1024 * 1024,
        ),
    )(ids, emb_bf16, lengths)


if __name__ == "__main__":
    # Module hyper-parameters (small, but 2 batch blocks x 4 vocab blocks so
    # both grid axes -- parallel batch + vocab reduction -- are exercised).
    batch_size = 16
    seq_len = 12
    vocab_size = 512
    embed_dim = 128
    hidden_dim = 32   # only used by init_hidden in the torch module; unused here

    key = jax.random.PRNGKey(0)
    k_emb, k_ids = jax.random.split(key)

    # nn.Embedding weight init: uniform(-0.1, 0.1)
    emb = jax.random.uniform(k_emb, (vocab_size, embed_dim),
                             dtype=jnp.float32, minval=-0.1, maxval=0.1)

    # token ids and per-example lengths
    ids = jax.random.randint(k_ids, (batch_size, seq_len), 0, vocab_size,
                             dtype=jnp.int32)
    lengths = jnp.full((batch_size, 1), float(seq_len), dtype=jnp.float32)

    out = cbow_forward(ids, emb, lengths, tv=128)   # tb defaults to 8 (2 blocks)
    out = jax.block_until_ready(out)

    # reference check in plain JAX (embedding gather -> sum -> div), f32.
    ref = jnp.take(emb, ids, axis=0).sum(axis=1) / lengths
    assert out.shape == (batch_size, embed_dim)
    # bf16 MXU inputs + approx reciprocal -> loosen tolerance vs pure-f32 ref.
    assert jnp.allclose(out, ref, atol=2e-3, rtol=2e-2), float(
        jnp.max(jnp.abs(out - ref)))

    print("KERNEL_OK")
</pallas_src>

<mosaic_0001>
module attributes {stable_mosaic.version = 11 : i64} {
  func.func @cbow_kernel(%arg0: i32, %arg1: i32, %arg2: memref<8x12xi32, #tpu.memory_space<vmem>>, %arg3: memref<128x128xbf16, #tpu.memory_space<vmem>>, %arg4: memref<8x1xf32, #tpu.memory_space<vmem>>, %arg5: memref<8x128xf32, #tpu.memory_space<vmem>>) attributes {dimension_semantics = [#tpu.dimension_semantics<parallel>, #tpu.dimension_semantics<arbitrary>], iteration_bounds = array<i64: 2, 4>, scalar_prefetch = 0 : i64, scratch_operands = 0 : i64, tpu.core_type = #tpu.core_type<tc>, window_params = [{transform_indices = @transform_0, window_bounds = array<i64: 8, 12>}, {transform_indices = @transform_1, window_bounds = array<i64: 128, 128>}, {transform_indices = @transform_2, window_bounds = array<i64: 8, 1>}, {transform_indices = @transform_3, window_bounds = array<i64: 8, 128>}]} {
    %c0_i32 = arith.constant 0 : i32
    %0 = arith.cmpi eq, %arg1, %c0_i32 : i32
    %1 = arith.extui %0 : i1 to i32
    %c0_i32_0 = arith.constant 0 : i32
    %2 = arith.cmpi ne, %1, %c0_i32_0 : i32
    scf.if %2 {
      %cst_10 = arith.constant 0.000000e+00 : f32
      %101 = vector.broadcast %cst_10 : f32 to vector<8x128xf32>
      %c0_11 = arith.constant 0 : index
      %c0_12 = arith.constant 0 : index
      %102 = vector.load %arg5[%c0_11, %c0_12] : memref<8x128xf32, #tpu.memory_space<vmem>>, vector<8x128xf32>
      tpu.vector_store %arg5[%c0_11, %c0_12], %101 {strides = array<i32>} : memref<8x128xf32, #tpu.memory_space<vmem>>, vector<8x128xf32>,
    } else {
    }
    %c0 = arith.constant 0 : index
    %c0_1 = arith.constant 0 : index
    %3 = vector.load %arg2[%c0, %c0_1] : memref<8x12xi32, #tpu.memory_space<vmem>>, vector<8x12xi32>
    %c128_i32 = arith.constant 128 : i32
    %4 = arith.muli %arg1, %c128_i32 : i32
    %5 = vector.broadcast %4 : i32 to vector<8x12xi32>
    %6 = arith.subi %3, %5 : vector<8x12xi32>
    %7 = tpu.iota {dimensions = array<i32: 1>} : vector<8x128xi32>
    %cst = arith.constant 0.000000e+00 : bf16
    %8 = vector.broadcast %cst : bf16 to vector<8x128xbf16>
    %9 = vector.extract_strided_slice %6 {offsets = [0, 0], sizes = [8, 1], strides = [1, 1]} : vector<8x12xi32> to vector<8x1xi32>
    %10 = vector.broadcast %9 : vector<8x1xi32> to vector<8x128xi32>
    %11 = arith.cmpi eq, %10, %7 : vector<8x128xi32>
    %12 = arith.extui %11 : vector<8x128xi1> to vector<8x128xi32>
    %13 = arith.sitofp %12 : vector<8x128xi32> to vector<8x128xf32>
    %14 = arith.truncf %13 : vector<8x128xf32> to vector<8x128xbf16>
    %15 = arith.addf %8, %14 : vector<8x128xbf16>
    %16 = vector.extract_strided_slice %6 {offsets = [0, 1], sizes = [8, 1], strides = [1, 1]} : vector<8x12xi32> to vector<8x1xi32>
    %17 = vector.broadcast %16 : vector<8x1xi32> to vector<8x128xi32>
    %18 = arith.cmpi eq, %17, %7 : vector<8x128xi32>
    %19 = arith.extui %18 : vector<8x128xi1> to vector<8x128xi32>
    %20 = arith.sitofp %19 : vector<8x128xi32> to vector<8x128xf32>
    %21 = arith.truncf %20 : vector<8x128xf32> to vector<8x128xbf16>
    %22 = arith.addf %15, %21 : vector<8x128xbf16>
    %23 = vector.extract_strided_slice %6 {offsets = [0, 2], sizes = [8, 1], strides = [1, 1]} : vector<8x12xi32> to vector<8x1xi32>
    %24 = vector.broadcast %23 : vector<8x1xi32> to vector<8x128xi32>
    %25 = arith.cmpi eq, %24, %7 : vector<8x128xi32>
    %26 = arith.extui %25 : vector<8x128xi1> to vector<8x128xi32>
    %27 = arith.sitofp %26 : vector<8x128xi32> to vector<8x128xf32>
    %28 = arith.truncf %27 : vector<8x128xf32> to vector<8x128xbf16>
    %29 = arith.addf %22, %28 : vector<8x128xbf16>
    %30 = vector.extract_strided_slice %6 {offsets = [0, 3], sizes = [8, 1], strides = [1, 1]} : vector<8x12xi32> to vector<8x1xi32>
    %31 = vector.broadcast %30 : vector<8x1xi32> to vector<8x128xi32>
    %32 = arith.cmpi eq, %31, %7 : vector<8x128xi32>
    %33 = arith.extui %32 : vector<8x128xi1> to vector<8x128xi32>
    %34 = arith.sitofp %33 : vector<8x128xi32> to vector<8x128xf32>
    %35 = arith.truncf %34 : vector<8x128xf32> to vector<8x128xbf16>
    %36 = arith.addf %29, %35 : vector<8x128xbf16>
    %37 = vector.extract_strided_slice %6 {offsets = [0, 4], sizes = [8, 1], strides = [1, 1]} : vector<8x12xi32> to vector<8x1xi32>
    %38 = vector.broadcast %37 : vector<8x1xi32> to vector<8x128xi32>
    %39 = arith.cmpi eq, %38, %7 : vector<8x128xi32>
    %40 = arith.extui %39 : vector<8x128xi1> to vector<8x128xi32>
    %41 = arith.sitofp %40 : vector<8x128xi32> to vector<8x128xf32>
    %42 = arith.truncf %41 : vector<8x128xf32> to vector<8x128xbf16>
    %43 = arith.addf %36, %42 : vector<8x128xbf16>
    %44 = vector.extract_strided_slice %6 {offsets = [0, 5], sizes = [8, 1], strides = [1, 1]} : vector<8x12xi32> to vector<8x1xi32>
    %45 = vector.broadcast %44 : vector<8x1xi32> to vector<8x128xi32>
    %46 = arith.cmpi eq, %45, %7 : vector<8x128xi32>
    %47 = arith.extui %46 : vector<8x128xi1> to vector<8x128xi32>
    %48 = arith.sitofp %47 : vector<8x128xi32> to vector<8x128xf32>
    %49 = arith.truncf %48 : vector<8x128xf32> to vector<8x128xbf16>
    %50 = arith.addf %43, %49 : vector<8x128xbf16>
    %51 = vector.extract_strided_slice %6 {offsets = [0, 6], sizes = [8, 1], strides = [1, 1]} : vector<8x12xi32> to vector<8x1xi32>
    %52 = vector.broadcast %51 : vector<8x1xi32> to vector<8x128xi32>
    %53 = arith.cmpi eq, %52, %7 : vector<8x128xi32>
    %54 = arith.extui %53 : vector<8x128xi1> to vector<8x128xi32>
    %55 = arith.sitofp %54 : vector<8x128xi32> to vector<8x128xf32>
    %56 = arith.truncf %55 : vector<8x128xf32> to vector<8x128xbf16>
    %57 = arith.addf %50, %56 : vector<8x128xbf16>
    %58 = vector.extract_strided_slice %6 {offsets = [0, 7], sizes = [8, 1], strides = [1, 1]} : vector<8x12xi32> to vector<8x1xi32>
    %59 = vector.broadcast %58 : vector<8x1xi32> to vector<8x128xi32>
    %60 = arith.cmpi eq, %59, %7 : vector<8x128xi32>
    %61 = arith.extui %60 : vector<8x128xi1> to vector<8x128xi32>
    %62 = arith.sitofp %61 : vector<8x128xi32> to vector<8x128xf32>
    %63 = arith.truncf %62 : vector<8x128xf32> to vector<8x128xbf16>
    %64 = arith.addf %57, %63 : vector<8x128xbf16>
    %65 = vector.extract_strided_slice %6 {offsets = [0, 8], sizes = [8, 1], strides = [1, 1]} : vector<8x12xi32> to vector<8x1xi32>
    %66 = vector.broadcast %65 : vector<8x1xi32> to vector<8x128xi32>
    %67 = arith.cmpi eq, %66, %7 : vector<8x128xi32>
    %68 = arith.extui %67 : vector<8x128xi1> to vector<8x128xi32>
    %69 = arith.sitofp %68 : vector<8x128xi32> to vector<8x128xf32>
    %70 = arith.truncf %69 : vector<8x128xf32> to vector<8x128xbf16>
    %71 = arith.addf %64, %70 : vector<8x128xbf16>
    %72 = vector.extract_strided_slice %6 {offsets = [0, 9], sizes = [8, 1], strides = [1, 1]} : vector<8x12xi32> to vector<8x1xi32>
    %73 = vector.broadcast %72 : vector<8x1xi32> to vector<8x128xi32>
    %74 = arith.cmpi eq, %73, %7 : vector<8x128xi32>
    %75 = arith.extui %74 : vector<8x128xi1> to vector<8x128xi32>
    %76 = arith.sitofp %75 : vector<8x128xi32> to vector<8x128xf32>
    %77 = arith.truncf %76 : vector<8x128xf32> to vector<8x128xbf16>
    %78 = arith.addf %71, %77 : vector<8x128xbf16>
    %79 = vector.extract_strided_slice %6 {offsets = [0, 10], sizes = [8, 1], strides = [1, 1]} : vector<8x12xi32> to vector<8x1xi32>
    %80 = vector.broadcast %79 : vector<8x1xi32> to vector<8x128xi32>
    %81 = arith.cmpi eq, %80, %7 : vector<8x128xi32>
    %82 = arith.extui %81 : vector<8x128xi1> to vector<8x128xi32>
    %83 = arith.sitofp %82 : vector<8x128xi32> to vector<8x128xf32>
    %84 = arith.truncf %83 : vector<8x128xf32> to vector<8x128xbf16>
    %85 = arith.addf %78, %84 : vector<8x128xbf16>
    %86 = vector.extract_strided_slice %6 {offsets = [0, 11], sizes = [8, 1], strides = [1, 1]} : vector<8x12xi32> to vector<8x1xi32>
    %87 = vector.broadcast %86 : vector<8x1xi32> to vector<8x128xi32>
    %88 = arith.cmpi eq, %87, %7 : vector<8x128xi32>
    %89 = arith.extui %88 : vector<8x128xi1> to vector<8x128xi32>
    %90 = arith.sitofp %89 : vector<8x128xi32> to vector<8x128xf32>
    %91 = arith.truncf %90 : vector<8x128xf32> to vector<8x128xbf16>
    %92 = arith.addf %85, %91 : vector<8x128xbf16>
    %c0_2 = arith.constant 0 : index
    %c0_3 = arith.constant 0 : index
    %93 = vector.load %arg5[%c0_2, %c0_3] : memref<8x128xf32, #tpu.memory_space<vmem>>, vector<8x128xf32>
    %c0_4 = arith.constant 0 : index
    %c0_5 = arith.constant 0 : index
    %94 = vector.load %arg3[%c0_4, %c0_5] : memref<128x128xbf16, #tpu.memory_space<vmem>>, vector<128x128xbf16>
    %cst_6 = arith.constant dense<0.000000e+00> : vector<8x128xf32>
    %95 = tpu.matmul %92, %94, %cst_6 {dimension_numbers = #tpu.dot_dimension_numbers<[1], [0], [0], [1], [0, 0, 1, 1], [], []>} : vector<8x128xbf16>, vector<128x128xbf16>, vector<8x128xf32> -> vector<8x128xf32>
    %96 = arith.addf %93, %95 : vector<8x128xf32>
    %c0_7 = arith.constant 0 : index
    %c0_8 = arith.constant 0 : index
    %97 = vector.load %arg5[%c0_7, %c0_8] : memref<8x128xf32, #tpu.memory_space<vmem>>, vector<8x128xf32>
    tpu.vector_store %arg5[%c0_7, %c0_8], %96 {strides = array<i32>} : memref<8x128xf32, #tpu.memory_space<vmem>>, vector<8x128xf32>,
    %c3_i32 = arith.constant 3 : i32
    %98 = arith.cmpi eq, %arg1, %c3_i32 : i32
    %99 = arith.extui %98 : i1 to i32
    %c0_i32_9 = arith.constant 0 : i32
    %100 = arith.cmpi ne, %99, %c0_i32_9 : i32
    scf.if %100 {
      %c0_10 = arith.constant 0 : index
      %c0_11 = arith.constant 0 : index
      %101 = vector.load %arg4[%c0_10, %c0_11] : memref<8x1xf32, #tpu.memory_space<vmem>>, vector<8x1xf32>
      %102 = tpu.reciprocal %101 {approx = true} : vector<8x1xf32> -> vector<8x1xf32>
      %c0_12 = arith.constant 0 : index
      %c0_13 = arith.constant 0 : index
      %103 = vector.load %arg5[%c0_12, %c0_13] : memref<8x128xf32, #tpu.memory_space<vmem>>, vector<8x128xf32>
      %104 = vector.broadcast %102 : vector<8x1xf32> to vector<8x128xf32>
      %105 = arith.mulf %103, %104 : vector<8x128xf32>
      %c0_14 = arith.constant 0 : index
      %c0_15 = arith.constant 0 : index
      %106 = vector.load %arg5[%c0_14, %c0_15] : memref<8x128xf32, #tpu.memory_space<vmem>>, vector<8x128xf32>
      tpu.vector_store %arg5[%c0_14, %c0_15], %105 {strides = array<i32>} : memref<8x128xf32, #tpu.memory_space<vmem>>, vector<8x128xf32>,
    } else {
    }
    return
  }
  func.func @transform_0(%arg0: i32, %arg1: i32) -> (i32, i32) {
    %c0_i32 = arith.constant 0 : i32
    %c0_i32_0 = arith.constant 0 : i32
    return %arg0, %c0_i32 : i32, i32
  }
  func.func @transform_1(%arg0: i32, %arg1: i32) -> (i32, i32) {
    %c0_i32 = arith.constant 0 : i32
    %c0_i32_0 = arith.constant 0 : i32
    return %arg1, %c0_i32 : i32, i32
  }
  func.func @transform_2(%arg0: i32, %arg1: i32) -> (i32, i32) {
    %c0_i32 = arith.constant 0 : i32
    %c0_i32_0 = arith.constant 0 : i32
    return %arg0, %c0_i32 : i32, i32
  }
  func.func @transform_3(%arg0: i32, %arg1: i32) -> (i32, i32) {
    %c0_i32 = arith.constant 0 : i32
    %c0_i32_0 = arith.constant 0 : i32
    return %arg0, %c0_i32 : i32, i32
  }
}

</mosaic_0001>

<bundles_post_ra>
// kernel: tpu_custom_call.1
= control target key start
LH: loop header
LB: loop body
LE: loop exit
PB: predicated region body
PF: predicated region fallthrough
CT: control target
= control target key end

     0   :  { %8 = vsyncpa [#allocation3], 0  ;;  %s1218_s0 = inlined_call_operand.vmem [shape: s32[16,12], index: 0, kind: input, shape index: {}]   ;;  %s1219_s1 = inlined_call_operand.hbm [shape: bf16[512,128], index: 1, kind: input, shape index: {}]   ;;  %s1220_s2 = inlined_call_operand.vmem [shape: f32[16,1], index: 2, kind: input, shape index: {}]   ;;  %s1221_s3 = inlined_call_operand.hbm [shape: f32[16,128], index: 3, kind: output, shape index: {}]  }
   0x1   :  { %10 = vsyncpa [#allocation3 + $0x1], 0 }
   0x2   :  { %11 = vsyncpa [#allocation4], 0 }
   0x3   :  { %13 = vsyncpa [#allocation4 + $0x1], 0  ;;  %s986_s12 = smov 0   ;;  %s988_s13 = smov 0  }
   0x4   :  { %s990_s14 = smov 0   ;;  %s992_s15 = smov 0  }
   0x5   :  { %s994_s16 = smov 0   ;;  %s996_s17 = smov 0  }
   0x6   :  { %s998_s18 = smov 0   ;;  %s1000_s19 = smov 0  }
   0x7   :  { %s1002_s20 = smov 0   ;;  %s1004_s21 = smov 0  }
   0x8   :  { %s1006_s22 = smov 0  }
   0x9 LB: > { %1226 = sst [smem:[#allocation8_spill]] %s936_s20  ;;  %s584_s23 = sadd.s32 4294967295, %s944_s22   ;;  %s944_s22 = sphi %s1006_s22, %s19_s22   ;;  %s940_s21 = sphi %s1004_s21, %s1238_s21   ;;  %s936_s20 = sphi %s1002_s20, %s1237_s20   ;;  %s932_s19 = sphi %s1000_s19, %s1236_s19   ;;  %s928_s18 = sphi %s998_s18, %s1235_s18   ;;  %s924_s17 = sphi %s996_s17, %s1244_s17   ;;  %s920_s16 = sphi %s994_s16, %s1243_s16   ;;  %s916_s15 = sphi %s992_s15, %s1242_s15   ;;  %s912_s14 = sphi %s990_s14, %s1241_s14   ;;  %s908_s13 = sphi %s988_s13, %s1240_s13   ;;  %s904_s12 = sphi %s986_s12, %s1239_s12  }
   0xa   : > { %1227 = sst [smem:[#allocation9_spill]] %s940_s21  ;;  %s585_s24 = sadd.s32 4294967294, %s944_s22  }
   0xb   : > { %s28_s25 = sadd.s32 1, %s936_s20  ;;  %s31_s26 = sadd.s32 1, %s940_s21 }
   0xc   : > { %p29_p0 = scmp.ge.s32.totalorder %s28_s25, 4  ;;  %s64_s27 = sadd.s32 1, %s924_s17 }
   0xd   : > { %p71_p1 = scmp.ne.s32.totalorder %s924_s17, %s920_s16  ;;  %p72_p2 = scmp.eq.s32.totalorder %s944_s22, 0 }
   0xe   : > { %s1246_s25 = smov (%p29_p0, %s28_s25), 0  ;;  %s1248_s26 = smov (!%p29_p0, %s31_s26), %s940_s21 }
   0xf   : > { %1228 = sst [smem:[#allocation10_spill]] %s1246_s25  ;;  %s61_s28 = ssub.s32 %s936_s20, %s1246_s25 }
  0x10   : > { %p1052_p3 = por %p72_p2, %p71_p1  ;;  %p33_p4 = scmp.ge.s32.totalorder %s1248_s26, 2 }
  0x11   : > { %p62_p5 = scmp.eq.s32.totalorder %s61_s28, 0  ;;  %p77_p6 = scmp.ne.s32.totalorder %s920_s16, %s916_s15 }
  0x12   : > { %p78_p7 = scmp.eq.s32.totalorder %s584_s23, 0  ;;  %s1250_s26 = smov (%p33_p4, %s1248_s26), 0 }
  0x13   : > { %1230 = sst [smem:[#allocation11_spill]] %s1250_s26  ;;  %s113_s5 = ssub.s32 %s940_s21, %s1250_s26 }
  0x14   : > { %s1060_s30 = scalar_select %p62_p5, %s924_s17, %s64_s27  }
  0x15   : > { %p1062_p8 = por %p78_p7, %p77_p6  ;;  %p114_p9 = scmp.eq.s32.totalorder %s113_s5, 0 }
  0x16   : > { %s116_s6 = sadd.s32 1, %s912_s14  ;;  %p126_p10 = scmp.ne.s32.totalorder %s912_s14, %s908_s13 }
  0x17   : > { %p127_p11 = scmp.eq.s32.totalorder %s584_s23, 7  ;;  %p132_p13 = scmp.ne.s32.totalorder %s908_s13, %s904_s12 }
  0x18   : > { %s1072_s7 = scalar_select %p114_p9, %s912_s14, %s116_s6  }
  0x19   : > { %p1074_p12 = por %p127_p11, %p126_p10  ;;  %p133_p0 = scmp.eq.s32.totalorder %s585_s24, 7 }
  0x1a   : > { %p665_p1 = scmp.lt.s32.totalorder %s944_s22, 8  ;;  %s160_s9 = sand.u32 1, %s924_s17  }
  0x1b   : > { %p1082_p2 = por %p133_p0, %p132_p13  ;;  %s588_s11 = sshll.u32 %s160_s9, 6 }
  0x1c   : > { %s623_s15 = sshll.u32 %s936_s20, 10  ;;  %s164_s5 = scalar_lea.vmem [#allocation2], %s588_s11 }
  0x1d   : > { %s170_s23 = scalar_lea.hbm %s1219_s1, %s623_s15  ;;  %s171_s6 = sshll.u32 %s164_s5, 4  ;;  %s172_s6 = int_to_ptr.vmem [resolvable:$true] %s171_s6 }
  0x1e   : > { %p1092_p4 = pnand %p665_p1, %p1052_p3  ;;  %s161_s24 = scalar_lea.sflag [#allocation3], %s160_s9 }
  0x1f   : > { %s809_s25 = scalar_lea.vmem %s172_s6, 1024  ;;  %s946_s21 = smov [#allocation2]  }
  0x20   : > { %p798_p5 = pneg %p1092_p4  ;;  %p810_p6 = scmp.ne.s32.totalorder %s172_s6, %s809_s25 }
  0x21   : > { %s814_s20 = sshll.u32 %s946_s21, 4  ;;  %s815_s20 = int_to_ptr.vmem [resolvable:$false] %s814_s20 }
  0x22   : > { %p812_p7 = pnand %p810_p6, %p798_p5  ;;  %s816_s15 = scalar_lea.vmem %s815_s20, 2048 }
  0x23   : > { %p817_p10 = scmp.lt.s32.totalorder %s172_s6, %s815_s20  ;;  %p818_p11 = scmp.lt.s32.totalorder %s816_s15, %s809_s25 }
  0x24   : > { %p813_p9 = pneg %p812_p7 }
  0x25   : > { %p819_p13 = por %p818_p11, %p817_p10 }
  0x27   : > { %p820_p3 = pnand %p819_p13, %p813_p9 }
  0x29   : > { %823 = shalt.err (!%p820_p3)
}
  0x2a   : > { %s947_s29 = smov 64   ;;  %s948_s9 = smov 4  }
  0x2b   : > { %660 = dma.hbm_to_vmem [thread:$0]  (!%p1092_p4), %s170_s23, 1024, %s172_s6, %s161_s24, %s947_s29, %s947_s29, %s948_s9  }
  0x2c   : > { %p591_p0 = scmp.ge.s32.totalorder %s944_s22, 1  ;;  %p186_p1 = scmp.lt.s32.totalorder %s944_s22, 9 }
  0x2e   : > { %p187_p5 = pnand %p591_p0, %p186_p1 }
  0x2f   : > { %s192_s21 = sand.u32 (!%p187_p5), 1, %s920_s16  }
  0x30   : > { %190 = sbr.rel (%p187_p5) target bundleno = 594 (0x252), region = 32  ;;  %s592_s11 = sshll.u32 (!%p187_p5), %s192_s21, 6 }
  0x31   : > { %s193_s20 = scalar_lea.sflag (!%p187_p5), [#allocation3], %s192_s21  ;;  %s1103_s25 = scalar_lea.vmem (!%p187_p5), [#allocation2], %s592_s11 }
  0x35   : > { %895 = dma.done.wait (%p1062_p8), %s193_s20, 1024  }
  0x36   : > { %897 = vsyncadd (%p1062_p8), %s193_s20, 4294966272  ;;  %s224_s26 = sand.u32 1, %s908_s13   ;;  %p227_p4 = scmp.lt.s32.totalorder %s932_s19, 1 }
  0x37   : > { %s593_s27 = sshll.u32 %s224_s26, 3  ;;  %p596_p8 = scmp.ne.s32.totalorder %s928_s18, 0 }
  0x38   : > { %s228_s28 = scalar_select %p227_p4, %s932_s19, 1 }
  0x39   : > { %s1122_s4 = scalar_lea.vmem [#allocation5], %s593_s27  ;;  %240 = sbr.rel (%p596_p8) target bundleno = 64 (0x40), region = 40 }
  0x3a   : > { %s594_s23 = sshll.u32 %s228_s28, 3 }
  0x3b   : > { %s230_s24 = scalar_lea.vmem %s1218_s0, %s594_s23  ;;  %s1120_s9 = scalar_lea.vmem %s1220_s2, %s594_s23 }
  0x3e   : > { %v949_v0 = vmov 0.0  }
  0x3f   : > { %241 = vst [vmem:[%s1122_s4] sm:$0xff] %v949_v0 }
  0x40 PF: > { %v242_v1 = vld [vmem:[%s230_s24] sm:$0xff]  ;;  %s597_s21 = sshll.u32 %s928_s18, 7  ;;  %v950_v2 = vmov 2   ;;  %v951_v3 = vmov 0   ;;  %v952_v6 = vmov 0.0   ;;  %v785_v7 = vld [vmem:[%s1103_s25 + $0x38] sm:$0xff]   ;;  %v246_v25 = vlaneseq }
  0x41   : > { %775 = vset.pattern.permute.xlu1 %v950_v2  ;;  %773 = vset.pattern.permute.xlu0 %v951_v3  ;;  %v244_v4 = vstv %s597_s21  ;;  %v953_v8 = vmov 3   ;;  %v954_v9 = vmov 1   ;;  %v786_v10 = vld [vmem:[%s1103_s25 + $0x30] sm:$0xff]   ;;  %v955_v11 = vmov 4   ;;  %v787_v13 = vld [vmem:[%s1103_s25 + $0x28] sm:$0xff]   ;;  %v788_v14 = vld [vmem:[%s1103_s25 + $0x20] sm:$0xff]  }
  0x42   : > { %v245_v5 = vsub.s32 %v242_v1, %v244_v4  ;;  %633 = vmatprep.subr.bf16.mxu0 %v952_v6  ;;  %v956_v12 = vmov 5   ;;  %v957_v15 = vmov 6   ;;  %v958_v16 = vmov 8   ;;  %v789_v17 = vld [vmem:[%s1103_s25 + $0x18] sm:$0xff]   ;;  %v790_v20 = vld [vmem:[%s1103_s25 + $0x10] sm:$0xff]   ;;  %v791_v22 = vld [vmem:[%s1103_s25 + $0x8] sm:$0xff]  }
  0x43   : > { %634 = vmatpush3.bf16.msra.mxu0 %v785_v7  ;;  %v959_v18 = vmov 7   ;;  %v960_v19 = vmov 11   ;;  %v961_v21 = vmov 9   ;;  %v962_v23 = vmov 10   ;;  %v792_v24 = vld [vmem:[%s1103_s25] sm:$0xff]   ;;  %p618_p6 = scmp.ne.s32.totalorder %s928_s18, 3 }
  0x44   : > { %265 = vperm.xlu1 %775, %v245_v5   ;;  %249 = vperm.xlu0 %773, %v245_v5   ;;  %vm963_vm0 = vmmov 0   ;;  %v247_v26 = vand.u32 127, %v246_v25 }
  0x45   : > { %635 = vmatprep.subr.bf16.mxu0 %v952_v6  ;;  %649 = vmatprep.mubr.msk.bf16.mxu0 %vm963_vm0, %v952_v6 }
  0x47   : > { %636 = vmatpush3.bf16.msra.mxu0 %v786_v10 }
  0x48   : > { %776 = vset.pattern.permute.xlu1 %v953_v8  ;;  %774 = vset.pattern.permute.xlu0 %v954_v9 }
  0x49   : > { %273 = vperm.xlu1 %776, %v245_v5   ;;  %257 = vperm.xlu0 %774, %v245_v5  }
  0x4a   : > { %637 = vmatprep.subr.bf16.mxu0 %v952_v6 }
  0x4b   : > { %638 = vmatpush3.bf16.msra.mxu0 %v787_v13 }
  0x4c   : > { %639 = vmatprep.subr.bf16.mxu0 %v952_v6 }
  0x4d   : > { %777 = vset.pattern.permute.xlu1 %v955_v11  ;;  %778 = vset.pattern.permute.xlu0 %v956_v12  ;;  %v344_v12 = vld [vmem:[%s1122_s4] sm:$0xff] }
  0x4e   : > { %281 = vperm.xlu1 %777, %v245_v5   ;;  %289 = vperm.xlu0 %778, %v245_v5  }
  0x4f   : > { %640 = vmatpush3.bf16.msra.mxu0 %v788_v14 }
  0x50   : > { %641 = vmatprep.subr.bf16.mxu0 %v952_v6 }
  0x52   : > { %779 = vset.pattern.permute.xlu1 %v957_v15  ;;  %781 = vset.pattern.permute.xlu0 %v958_v16 }
  0x53   : > { %297 = vperm.xlu1 %779, %v245_v5   ;;  %313 = vperm.xlu0 %781, %v245_v5  }
  0x54   : > { %642 = vmatpush3.bf16.msra.mxu0 %v789_v17 }
  0x55   : > { %643 = vmatprep.subr.bf16.mxu0 %v952_v6 }
  0x57   : > { %780 = vset.pattern.permute.xlu1 %v959_v18  ;;  %784 = vset.pattern.permute.xlu0 %v960_v19 }
  0x58   : > { %305 = vperm.xlu1 %780, %v245_v5   ;;  %337 = vperm.xlu0 %784, %v245_v5  }
  0x59   : > { %644 = vmatpush3.bf16.msra.mxu0 %v790_v20 }
  0x5a   : > { %645 = vmatprep.subr.bf16.mxu0 %v952_v6 }
  0x5c   : > { %782 = vset.pattern.permute.xlu1 %v961_v21 }
  0x5d   : > { %321 = vperm.xlu1 %782, %v245_v5   ;;  %646 = vmatpush3.bf16.msra.mxu0 %v791_v22 }
  0x5e   : > { %647 = vmatprep.subr.bf16.mxu0 %v952_v6 }
  0x61   : > { %783 = vset.pattern.permute.xlu1 %v962_v23  ;;  %648 = vmatpush3.bf16.msra.mxu0 %v792_v24 }
  0x62   : > { %329 = vperm.xlu1 %783, %v245_v5  }
  0xbf   : > { %v266_v27 = vpop.permute.xlu1 %265  ;;  %v250_v28 = vpop.permute.xlu0 %249 }
  0xc0   : > { %vm251_vm1 = vcmp.eq.s32.totalorder %v250_v28, %v247_v26  ;;  %vm267_vm2 = vcmp.eq.s32.totalorder %v266_v27, %v247_v26 }
  0xc1   : > { %v598_v29 = vsel %vm251_vm1, 1.0, %v952_v6  ;;  %v600_v34 = vsel %vm267_vm2, 1.0, %v952_v6 }
  0xc2   : > { %v254_v30 = vpack.c.bf16 %v598_v29, %v598_v29  ;;  %v270_v38 = vpack.c.bf16 %v600_v34, %v600_v34 }
  0xc4   : > { %v274_v31 = vpop.permute.xlu1 %273  ;;  %v258_v32 = vpop.permute.xlu0 %257  ;;  %v255_v33 = vadd.bf16 0, %v254_v30 }
  0xc5   : > { %vm275_vm3 = vcmp.eq.s32.totalorder %v274_v31, %v247_v26  ;;  %vm259_vm4 = vcmp.eq.s32.totalorder %v258_v32, %v247_v26 }
  0xc6   : > { %v599_v35 = vsel %vm259_vm4, 1.0, %v952_v6  ;;  %v601_v37 = vsel %vm275_vm3, 1.0, %v952_v6 }
  0xc7   : > { %v262_v36 = vpack.c.bf16 %v599_v35, %v599_v35  ;;  %v278_v42 = vpack.c.bf16 %v601_v37, %v601_v37 }
  0xc9   : > { %v263_v39 = vadd.bf16 %v262_v36, %v255_v33  ;;  %v282_v40 = vpop.permute.xlu1 %281  ;;  %v290_v41 = vpop.permute.xlu0 %289 }
  0xca   : > { %vm283_vm5 = vcmp.eq.s32.totalorder %v282_v40, %v247_v26  ;;  %vm291_vm6 = vcmp.eq.s32.totalorder %v290_v41, %v247_v26 }
  0xcb   : > { %v271_v43 = vadd.bf16 %v270_v38, %v263_v39  ;;  %v602_v44 = vsel %vm283_vm5, 1.0, %v952_v6  ;;  %v603_v45 = vsel %vm291_vm6, 1.0, %v952_v6 }
  0xcc   : > { %v286_v46 = vpack.c.bf16 %v602_v44, %v602_v44  ;;  %v294_v48 = vpack.c.bf16 %v603_v45, %v603_v45 }
  0xcd   : > { %v279_v47 = vadd.bf16 %v278_v42, %v271_v43 }
  0xce   : > { %v298_v49 = vpop.permute.xlu1 %297  ;;  %v314_v51 = vpop.permute.xlu0 %313 }
  0xcf   : > { %v287_v50 = vadd.bf16 %v286_v46, %v279_v47  ;;  %vm299_vm7 = vcmp.eq.s32.totalorder %v298_v49, %v247_v26  ;;  %vm315_vm8 = vcmp.eq.s32.totalorder %v314_v51, %v247_v26 }
  0xd0   : > { %v604_v52 = vsel %vm299_vm7, 1.0, %v952_v6  ;;  %v606_v57 = vsel %vm315_vm8, 1.0, %v952_v6 }
  0xd1   : > { %v295_v53 = vadd.bf16 %v294_v48, %v287_v50  ;;  %v302_v54 = vpack.c.bf16 %v604_v52, %v604_v52  ;;  %v318_v62 = vpack.c.bf16 %v606_v57, %v606_v57 }
  0xd3   : > { %v306_v55 = vpop.permute.xlu1 %305  ;;  %v303_v58 = vadd.bf16 %v302_v54, %v295_v53  ;;  %v338_v60 = vpop.permute.xlu0 %337 }
  0xd4   : > { %vm307_vm9 = vcmp.eq.s32.totalorder %v306_v55, %v247_v26  ;;  %vm339_vm11 = vcmp.eq.s32.totalorder %v338_v60, %v247_v26 }
  0xd5   : > { %v605_v56 = vsel %vm307_vm9, 1.0, %v952_v6  ;;  %v609_v4 = vsel %vm339_vm11, 1.0, %v952_v6 }
  0xd6   : > { %v310_v59 = vpack.c.bf16 %v605_v56, %v605_v56  ;;  %v342_v9 = vpack.c.bf16 %v609_v4, %v609_v4 }
  0xd8   : > { %v311_v61 = vadd.bf16 %v310_v59, %v303_v58  ;;  %v322_v63 = vpop.permute.xlu1 %321 }
  0xd9   : > { %vm323_vm10 = vcmp.eq.s32.totalorder %v322_v63, %v247_v26 }
  0xda   : > { %v607_v0 = vsel %vm323_vm10, 1.0, %v952_v6  ;;  %v319_v1 = vadd.bf16 %v318_v62, %v311_v61 }
  0xdb   : > { %v326_v2 = vpack.c.bf16 %v607_v0, %v607_v0 }
  0xdd   : > { %v330_v3 = vpop.permute.xlu1 %329  ;;  %v327_v7 = vadd.bf16 %v326_v2, %v319_v1 }
  0xde   : > { %vm331_vm12 = vcmp.eq.s32.totalorder %v330_v3, %v247_v26 }
  0xdf   : > { %v608_v5 = vsel %vm331_vm12, 1.0, %v952_v6 }
  0xe0   : > { %v334_v8 = vpack.c.bf16 %v608_v5, %v608_v5 }
  0xe2   : > { %v335_v10 = vadd.bf16 %v334_v8, %v327_v7 }
  0xe4   : > { %v343_v11 = vadd.bf16 %v342_v9, %v335_v10 }
  0xe6   : > { %650 = vmatmul.mubr.bf16.vlgmr.msra.gmra.mxu0 %v343_v11 }
 0x1a6   : > { %v443_v13 = vpop.f32.mrf.mxu0 }
 0x1a7   : > { %v449_v14 = vadd.f32 %v443_v13, %v344_v12 }
 0x1a8   : > { %v651_v15 = vpop.f32.mrf.mxu0  ;;  %454 = sbr.rel (%p618_p6) target bundleno = 571 (0x23b), region = 44 }
 0x1a9   : > { %450 = vst [vmem:[%s1122_s4] sm:$0xff] %v449_v14 }
 0x1aa   : > { %v446_v16 = vpop.f32.mrf.mxu0 }
 0x1ac   : > { %v652_v17 = vpop.f32.mrf.mxu0 }
 0x1ad   : > { %v455_v6 = vld [vmem:[%s1120_s9] sm:$0xff]  ;;  %v964_v18 = vmov 0  }
 0x1ae   : > { %793 = vset.pattern.permute.xlu0 %v964_v18  ;;  %794 = vrcp.f32 %v455_v6 }
 0x1b0   : > { %v457_v20 = vld [vmem:[%s1122_s4] sm:$0xff] }
 0x1bb   : > { %v795_v19 = vpop.eup %794 }
 0x1bc   : > { %460 = vperm.xlu0 %793, %v795_v19  }
 0x237   : > { %v461_v21 = vpop.permute.xlu0 %460 }
 0x238   : > { %v463_v22 = vmul.f32 %v461_v21, %v457_v20 }
 0x23a   : > { %464 = vst [vmem:[%s1122_s4] sm:$0xff] %v463_v22 }
 0x23b PF: > { %s620_s18 = sshll.u32 %s932_s19, 7  ;;  %s479_s27 = sshll.u32 %s1122_s4, 4  ;;  %s480_s27 = int_to_ptr.vmem [resolvable:$true] %s479_s27 }
 0x23c   : > { %s477_s25 = scalar_lea.hbm %s1221_s3, %s620_s18  ;;  %s466_s28 = scalar_lea.sflag [#allocation4], %s224_s26 }
 0x23d   : > { %s824_s23 = scalar_lea.vmem %s480_s27, 128  ;;  %s965_s5 = smov [#allocation5]  }
 0x23e   : > { %p825_p7 = scmp.ne.s32.totalorder %s480_s27, %s824_s23  ;;  %s828_s6 = sshll.u32 %s965_s5, 4  ;;  %s829_s6 = int_to_ptr.vmem [resolvable:$false] %s828_s6 }
 0x23f   : > { %s830_s24 = scalar_lea.vmem %s829_s6, 256  ;;  %p831_p11 = scmp.lt.s32.totalorder %s480_s27, %s829_s6 }
 0x240   : > { %p826_p9 = pnand %p825_p7, %p1074_p12  ;;  %p832_p13 = scmp.lt.s32.totalorder %s830_s24, %s824_s23 }
 0x242   : > { %p827_p10 = pneg %p826_p9  ;;  %p833_p3 = por %p832_p13, %p831_p11 }
 0x244   : > { %p834_p0 = pnand %p833_p3, %p827_p10 }
 0x246   : > { %837 = shalt.err (!%p834_p0)
}
 0x247   : > { %s838_s19 = scalar_lea.hbm %s477_s25, 128  ;;  %s842_s29 = scalar_lea.hbm %s1221_s3, 256 }
 0x248   : > { %p839_p1 = scmp.ne.s32.totalorder %s477_s25, %s838_s19  ;;  %p843_p8 = scmp.lt.s32.totalorder %s477_s25, %s1221_s3 }
 0x249   : > { %p844_p6 = scmp.lt.s32.totalorder %s842_s29, %s838_s19 }
 0x24a   : > { %p840_p5 = pnand %p839_p1, %p1074_p12 }
 0x24b   : > { %p845_p7 = por %p844_p6, %p843_p8 }
 0x24c   : > { %p841_p4 = pneg %p840_p5 }
 0x24e   : > { %p846_p9 = pnand %p845_p7, %p841_p4 }
 0x250   : > { %849 = shalt.err (!%p846_p9)
}
 0x251   : > { %655 = dma.vmem_to_hbm [thread:$0]  (%p1074_p12), %s480_s27, 128, %s477_s25, %s466_s28  }
 0x252 PF: > { %p666_p10 = scmp.ge.s32.totalorder %s944_s22, 2  ;;  %s491_s21 = sand.u32 1, %s904_s12  }
 0x253   : > { %s492_s18 = scalar_lea.sflag [#allocation4], %s491_s21 }
 0x254   : > { %p662_p11 = pnand %p666_p10, %p1082_p2 }
 0x256   : > { %p663_p13 = pneg %p662_p11 }
 0x258   : > { %899 = dma.done.wait (%p663_p13), %s492_s18, 128  }
 0x259   : > { %901 = vsyncadd (%p663_p13), %s492_s18, 4294967168  ;;  %s19_s22 = sadd.s32 1, %s944_s22   ;;  %s1235_s18 = sld [smem:[#allocation8_spill]] }
 0x25a   : > { %p16_p3 = scmp.ge.s32.totalorder %s19_s22, 10   ;;  %s1236_s19 = sld [smem:[#allocation9_spill]] }
 0x25b   : > { %s1237_s20 = sld [smem:[#allocation10_spill]]  ;;  %s1239_s12 = smov %s908_s13 }
 0x25c   : > { %s1238_s21 = sld [smem:[#allocation11_spill]]  ;;  %s1240_s13 = smov %s912_s14 }
 0x25d   : > { %s1241_s14 = smov %s1072_s7  ;;  %s1242_s15 = smov %s920_s16 }
 0x25e   : > { %s1243_s16 = smov %s924_s17  ;;  %s1244_s17 = smov %s1060_s30 }
 0x25f   :  { %18 = sbr.rel (!%p16_p3) target bundleno = 9 (0x9), region = 91 }
 0x264   :  { %497 = vsyncpa [#allocation3], 1 }
 0x265   :  { %499 = vsyncpa [#allocation3 + $0x1], 1 }
 0x266   :  { %500 = vsyncpa [#allocation4], 1 }
 0x267   :  { %502 = vsyncpa [#allocation4 + $0x1], 1 }

</bundles_post_ra>
